<compile_context>
chip_gen: v7x
topology: tpu7x:2x2x1
jax: 0.10.0
libtpu: 0.0.40
codegen_flags: <defaults>
</compile_context>

<pallas_src>
import functools

import jax
import jax.numpy as jnp
from jax.experimental import pallas as pl
from jax.experimental.pallas import tpu as pltpu


_VMEM_LIMIT_BYTES = 48 * 1024 * 1024        # safe on v5e/v6e (128 MiB) and v7x (64 MiB)
_PRED_VMEM_BUDGET_BYTES = 24 * 1024 * 1024  # double-buffered pred blocks (v7x-safe)


def _choose_tile_n(n, c, itemsize):
    """Largest batch-tile keeping 2 x (tile_n, C) pred buffers under budget."""
    # sublane packing: 8 rows for 32-bit, 16 for 16-bit, 32 for 8-bit dtypes
    sub = {4: 8, 2: 16, 1: 32}.get(itemsize, 8)
    max_rows = max(sub, _PRED_VMEM_BUDGET_BYTES // (2 * max(c, 1) * itemsize))
    tile = min(n, max_rows)
    if tile >= n:
        return n                      # block == full array extent is always legal
    return max(sub, (tile // sub) * sub)


def _label_smoothing_kernel(pred_ref, target_ref, out_ref, *,
                            total_n, tile_n, confidence, off_value):
    i = pl.program_id(0)

    x = pred_ref[...].astype(jnp.float32)                    # (tile_n, C)
    tn, c = x.shape

    # log-softmax pieces; the full (tile_n, C) logp is never materialized.
    x_max = jnp.max(x, axis=-1, keepdims=True)                # (tile_n, 1)
    shifted = x - x_max
    lse = jnp.log(jnp.sum(jnp.exp(shifted), axis=-1, keepdims=True))   # (tile_n, 1)

    # sum_j logp[i, j] = sum_j shifted[i, j] - C * lse[i]
    sum_logp = jnp.sum(shifted, axis=-1, keepdims=True) - jnp.float32(c) * lse

    # logp[i, target[i]] = shifted[i, target[i]] - lse[i]  (iota==target select-reduce)
    col_ids = jax.lax.broadcasted_iota(jnp.int32, (tn, c), 1)
    tgt = target_ref[...]                                     # (tile_n, 1) int32
    shifted_at_tgt = jnp.sum(jnp.where(col_ids == tgt, shifted, 0.0),
                             axis=-1, keepdims=True)
    logp_at_tgt = shifted_at_tgt - lse

    # loss_i = -(off * sum_logp_i + (confidence - off) * logp_at_tgt_i)
    per_row = -(jnp.float32(off_value) * sum_logp
                + jnp.float32(confidence - off_value) * logp_at_tgt)   # (tile_n, 1)

    # mask rows past the true batch size (ragged last tile reads padding/garbage)
    row_ids = i * tile_n + jax.lax.broadcasted_iota(jnp.int32, (tn, 1), 0)
    per_row = jnp.where(row_ids < total_n, per_row, 0.0)

    # lane-dense per-tile partial sum; each grid step writes its own block,
    # so the batch axis can be marked "parallel" (megacore sharding).
    out_ref[...] = jnp.full(out_ref.shape, jnp.sum(per_row), dtype=jnp.float32)


def label_smoothing_loss(pred, target, *, num_classes, smoothing=0.1, tile_n=None):
    """pred: (N, C) float (any dtype), target: (N,) int. Returns scalar f32 loss.

    For tiny problems (a few KiB) pure-JAX/XLA beats the fixed pallas_call
    overhead; this kernel pays off at training-scale N x C.
    """
    assert 0 <= smoothing < 1
    # NOTE: num_classes == 1 divides by zero (inherited from the PyTorch reference).
    n, c = pred.shape
    confidence = 1.0 - smoothing
    off_value = smoothing / (num_classes - 1)

    target2d = target.astype(jnp.int32).reshape(n, 1)

    if tile_n is None:
        tile_n = _choose_tile_n(n, c, pred.dtype.itemsize)
    grid = pl.cdiv(n, tile_n)

    kernel = functools.partial(
        _label_smoothing_kernel,
        total_n=n, tile_n=tile_n, confidence=confidence, off_value=off_value)

    partials = pl.pallas_call(
        kernel,
        out_shape=jax.ShapeDtypeStruct((grid, 8, 128), jnp.float32),
        grid_spec=pltpu.PrefetchScalarGridSpec(
            num_scalar_prefetch=0,
            grid=(grid,),
            in_specs=[
                pl.BlockSpec((tile_n, c), lambda i: (i, 0)),   # native dtype, cast on-chip
                pl.BlockSpec((tile_n, 1), lambda i: (i, 0)),
            ],
            out_specs=pl.BlockSpec((1, 8, 128), lambda i: (i, 0, 0)),
        ),
        compiler_params=pltpu.CompilerParams(
            dimension_semantics=("parallel",),
            vmem_limit_bytes=_VMEM_LIMIT_BYTES,
        ),
    )(pred, target2d)

    # tiny epilogue in XLA: sum of per-tile partials, mean over the *total* batch
    return jnp.sum(partials[:, 0, 0]) / jnp.float32(n)


def label_smoothing_loss_ref(pred, target, *, num_classes, smoothing=0.1):
    """Pure-JAX reference mirroring the PyTorch module."""
    confidence = 1.0 - smoothing
    logp = jax.nn.log_softmax(pred.astype(jnp.float32), axis=-1)
    dist = jnp.full_like(logp, smoothing / (num_classes - 1))
    dist = dist.at[jnp.arange(pred.shape[0]), target].set(confidence)
    return jnp.mean(jnp.sum(-dist * logp, axis=-1))


if __name__ == "__main__":
    key = jax.random.PRNGKey(0)
    k1, k2, k3, k4 = jax.random.split(key, 4)

    # 1) CIFAR10-flavoured toy shape: batch=8 logits over 10 classes (single tile).
    NUM_CLASSES, BATCH, SMOOTHING = 10, 8, 0.1
    pred = jax.random.normal(k1, (BATCH, NUM_CLASSES), dtype=jnp.float32)
    target = jax.random.randint(k2, (BATCH,), 0, NUM_CLASSES, dtype=jnp.int32)

    loss = jax.block_until_ready(
        label_smoothing_loss(pred, target, num_classes=NUM_CLASSES, smoothing=SMOOTHING))
    ref = jax.block_until_ready(
        label_smoothing_loss_ref(pred, target, num_classes=NUM_CLASSES, smoothing=SMOOTHING))
    assert jnp.allclose(loss, ref, atol=1e-5, rtol=1e-5), (loss, ref)

    # 2) Multi-tile + ragged-last-tile path: batch=100, classes=16, tile_n=32.
    N2, C2 = 100, 16
    pred2 = jax.random.normal(k3, (N2, C2), dtype=jnp.float32)
    target2 = jax.random.randint(k4, (N2,), 0, C2, dtype=jnp.int32)
    loss2 = jax.block_until_ready(
        label_smoothing_loss(pred2, target2, num_classes=C2, smoothing=SMOOTHING, tile_n=32))
    ref2 = jax.block_until_ready(
        label_smoothing_loss_ref(pred2, target2, num_classes=C2, smoothing=SMOOTHING))
    assert jnp.allclose(loss2, ref2, atol=1e-5, rtol=1e-5), (loss2, ref2)

    # 3) Native bf16 input (no f32 up-cast in HBM; cast happens in-kernel).
    pred_bf16 = pred.astype(jnp.bfloat16)
    loss_bf16 = jax.block_until_ready(
        label_smoothing_loss(pred_bf16, target, num_classes=NUM_CLASSES, smoothing=SMOOTHING))
    ref_bf16 = jax.block_until_ready(
        label_smoothing_loss_ref(pred_bf16, target, num_classes=NUM_CLASSES, smoothing=SMOOTHING))
    assert jnp.allclose(loss_bf16, ref_bf16, atol=1e-4, rtol=1e-4), (loss_bf16, ref_bf16)

    print("KERNEL_OK")
</pallas_src>

<mosaic_0001>
module attributes {stable_mosaic.version = 11 : i64} {
  func.func @_label_smoothing_kernel(%arg0: i32, %arg1: memref<8x10xf32, #tpu.memory_space<vmem>>, %arg2: memref<8x1xi32, #tpu.memory_space<vmem>>, %arg3: memref<1x8x128xf32, #tpu.memory_space<vmem>>) attributes {dimension_semantics = [#tpu.dimension_semantics<parallel>], iteration_bounds = array<i64: 1>, scalar_prefetch = 0 : i64, scratch_operands = 0 : i64, tpu.core_type = #tpu.core_type<tc>, window_params = [{transform_indices = @transform_0, window_bounds = array<i64: 8, 10>}, {transform_indices = @transform_1, window_bounds = array<i64: 8, 1>}, {transform_indices = @transform_2, window_bounds = array<i64: 1, 8, 128>}]} {
    %c0 = arith.constant 0 : index
    %c0_0 = arith.constant 0 : index
    %0 = vector.load %arg1[%c0, %c0_0] : memref<8x10xf32, #tpu.memory_space<vmem>>, vector<8x10xf32>
    %cst = arith.constant dense<0xFF800000> : vector<8xf32>
    %1 = vector.multi_reduction <maximumf>, %0, %cst [1] : vector<8x10xf32> to vector<8xf32>
    %2 = vector.shape_cast %1 : vector<8xf32> to vector<8x1xf32>
    %3 = vector.broadcast %2 : vector<8x1xf32> to vector<8x10xf32>
    %4 = arith.subf %0, %3 : vector<8x10xf32>
    %5 = math.exp %4 : vector<8x10xf32>
    %cst_1 = arith.constant dense<0.000000e+00> : vector<8xf32>
    %6 = vector.multi_reduction <add>, %5, %cst_1 [1] : vector<8x10xf32> to vector<8xf32>
    %7 = vector.shape_cast %6 : vector<8xf32> to vector<8x1xf32>
    %8 = math.log %7 : vector<8x1xf32>
    %cst_2 = arith.constant dense<0.000000e+00> : vector<8xf32>
    %9 = vector.multi_reduction <add>, %4, %cst_2 [1] : vector<8x10xf32> to vector<8xf32>
    %10 = vector.shape_cast %9 : vector<8xf32> to vector<8x1xf32>
    %cst_3 = arith.constant 1.000000e+01 : f32
    %11 = vector.broadcast %cst_3 : f32 to vector<8x1xf32>
    %12 = arith.mulf %11, %8 : vector<8x1xf32>
    %13 = arith.subf %10, %12 : vector<8x1xf32>
    %14 = tpu.iota {dimensions = array<i32: 1>} : vector<8x10xi32>
    %c0_4 = arith.constant 0 : index
    %c0_5 = arith.constant 0 : index
    %15 = vector.load %arg2[%c0_4, %c0_5] : memref<8x1xi32, #tpu.memory_space<vmem>>, vector<8x1xi32>
    %16 = vector.broadcast %15 : vector<8x1xi32> to vector<8x10xi32>
    %17 = arith.cmpi eq, %14, %16 : vector<8x10xi32>
    %cst_6 = arith.constant 0.000000e+00 : f32
    %18 = vector.broadcast %cst_6 : f32 to vector<8x10xf32>
    %19 = arith.select %17, %4, %18 : vector<8x10xi1>, vector<8x10xf32>
    %cst_7 = arith.constant dense<0.000000e+00> : vector<8xf32>
    %20 = vector.multi_reduction <add>, %19, %cst_7 [1] : vector<8x10xf32> to vector<8xf32>
    %21 = vector.shape_cast %20 : vector<8xf32> to vector<8x1xf32>
    %22 = arith.subf %21, %8 : vector<8x1xf32>
    %cst_8 = arith.constant 0.0111111114 : f32
    %23 = vector.broadcast %cst_8 : f32 to vector<8x1xf32>
    %24 = arith.mulf %23, %13 : vector<8x1xf32>
    %cst_9 = arith.constant 0.888888895 : f32
    %25 = vector.broadcast %cst_9 : f32 to vector<8x1xf32>
    %26 = arith.mulf %25, %22 : vector<8x1xf32>
    %27 = arith.addf %24, %26 : vector<8x1xf32>
    %cst_10 = arith.constant 0.000000e+00 : f32
    %28 = vector.broadcast %cst_10 : f32 to vector<8x1xf32>
    %29 = arith.subf %28, %27 : vector<8x1xf32>
    %c8_i32 = arith.constant 8 : i32
    %30 = arith.muli %arg0, %c8_i32 : i32
    %31 = tpu.iota {dimensions = array<i32: 0>} : vector<8x1xi32>
    %32 = vector.broadcast %30 : i32 to vector<8x1xi32>
    %33 = arith.addi %32, %31 : vector<8x1xi32>
    %c8_i32_11 = arith.constant 8 : i32
    %34 = vector.broadcast %c8_i32_11 : i32 to vector<8x1xi32>
    %35 = arith.cmpi slt, %33, %34 : vector<8x1xi32>
    %cst_12 = arith.constant 0.000000e+00 : f32
    %36 = vector.broadcast %cst_12 : f32 to vector<8x1xf32>
    %37 = arith.select %35, %29, %36 : vector<8x1xi1>, vector<8x1xf32>
    %38 = vector.shape_cast %37 : vector<8x1xf32> to vector<1x8x1xf32>
    %cst_13 = arith.constant dense<0.000000e+00> : vector<1xf32>
    %39 = vector.multi_reduction <add>, %38, %cst_13 [1, 2] : vector<1x8x1xf32> to vector<1xf32>
    %40 = vector.shape_cast %39 : vector<1xf32> to vector<1x1x1xf32>
    %41 = vector.extract %40[0, 0, 0] : f32 from vector<1x1x1xf32>
    %42 = vector.broadcast %41 : f32 to vector<1x8x128xf32>
    %c0_14 = arith.constant 0 : index
    %c0_15 = arith.constant 0 : index
    %c0_16 = arith.constant 0 : index
    %43 = vector.load %arg3[%c0_14, %c0_15, %c0_16] : memref<1x8x128xf32, #tpu.memory_space<vmem>>, vector<1x8x128xf32>
    tpu.vector_store %arg3[%c0_14, %c0_15, %c0_16], %42 {strides = array<i32>} : memref<1x8x128xf32, #tpu.memory_space<vmem>>, vector<1x8x128xf32>,
    return
  }
  func.func @transform_0(%arg0: i32) -> (i32, i32) {
    %c0_i32 = arith.constant 0 : i32
    %c0_i32_0 = arith.constant 0 : i32
    return %arg0, %c0_i32 : i32, i32
  }
  func.func @transform_1(%arg0: i32) -> (i32, i32) {
    %c0_i32 = arith.constant 0 : i32
    %c0_i32_0 = arith.constant 0 : i32
    return %arg0, %c0_i32 : i32, i32
  }
  func.func @transform_2(%arg0: i32) -> (i32, i32, i32) {
    %c0_i32 = arith.constant 0 : i32
    %c0_i32_0 = arith.constant 0 : i32
    %c0_i32_1 = arith.constant 0 : i32
    return %arg0, %c0_i32, %c0_i32_0 : i32, i32, i32
  }
}

</mosaic_0001>

<bundles_post_ra>
// kernel: tpu_custom_call.1
= control target key start
LH: loop header
LB: loop body
LE: loop exit
PB: predicated region body
PF: predicated region fallthrough
CT: control target
= control target key end

     0   :  { %vm13_vm0 = vcmask 80896   ;;  %s152_s0 = inlined_call_operand.vmem [shape: f32[8,10], index: 0, kind: input, shape index: {}]   ;;  %s153_s1 = inlined_call_operand.vmem [shape: s32[8,1], index: 1, kind: input, shape index: {}]   ;;  %s154_s2 = inlined_call_operand.hbm [shape: f32[1,8,128], index: 2, kind: output, shape index: {}]  }
   0x1   :  { %v12_v0 = vld [vmem:[%s152_s0] sm:$0xff] }
   0x2   :  { %7 = vsyncpa [#allocation3], 0  ;;  %v14_v1 = vsel %vm13_vm0, %v12_v0, -inf  ;;  %v113_v2 = vmov 0   ;;  %v32_v3 = vld [vmem:[%s153_s1] sm:$0xff]  ;;  %v30_v7 = vlaneseq  ;;  %vm53_vm2 = vcmask 7168  }
   0x3   :  { %84 = vset.pattern.permute.xlu0 %v113_v2  ;;  %s114_s0 = smov [#allocation2]  }
   0x4   :  { %15 = vmax.xlane.f32.xlu0 %v14_v1  ;;  %v31_v8 = vand.u32 127, %v30_v7  ;;  %s72_s1 = sshll.u32 %s114_s0, 4  ;;  %s73_s1 = int_to_ptr.vmem [resolvable:$true] %s72_s1 }
   0x5   :  { %s89_s14 = scalar_lea.vmem %s73_s1, 128  ;;  %p94_p1 = scmp.lt.s32.totalorder %s73_s1, %s73_s1 }
   0x6   :  { %p90_p0 = scmp.ne.s32.totalorder %s73_s1, %s89_s14  ;;  %p95_p2 = scmp.lt.s32.totalorder %s89_s14, %s89_s14 }
   0x8   :  { %p96_p3 = por %p95_p2, %p94_p1 }
   0xa   :  { %p97_p4 = pnand %p96_p3, %p90_p0 }
  0x1a   :  { %34 = vperm.xlu0 %84, %v32_v3  }
  0x91   :  { %v16_v4 = vpop.xlane.xlu0 %15 }
  0x92   :  { %v17_v5 = vsub.f32 %v12_v0, %v16_v4 }
  0x94   :  { %v18_v6 = vmul.f32 1.442695, %v17_v5  ;;  %v25_v12 = vsel %vm13_vm0, %v17_v5, 0.0 }
  0x96   :  { %85 = vpow2.f32 %v18_v6 }
  0x99   :  { %v35_v10 = vpop.permute.xlu0 %34 }
  0x9a   :  { %vm36_vm1 = vcmp.eq.s32.totalorder %v31_v8, %v35_v10 }
  0x9b   :  { %v37_v13 = vsel %vm36_vm1, %v17_v5, 0.0 }
  0x9c   :  { %v38_v14 = vsel %vm13_vm0, %v37_v13, 0.0 }
  0xa0   :  { %v86_v9 = vpop.eup %85 }
  0xa1   :  { %v20_v11 = vsel %vm13_vm0, %v86_v9, 0.0 }
  0xa2   :  { %21 = vadd.xlane.f32.xlu1 %v20_v11 }
  0xa6   :  { %26 = vadd.xlane.f32.xlu1 %v25_v12 }
  0xaa   :  { %39 = vadd.xlane.f32.xlu1 %v38_v14 }
 0x12f   :  { %v22_v15 = vpop.xlane.xlu1 %21 }
 0x130   :  { %87 = vlog2.f32 %v22_v15 }
 0x133   :  { %v27_v16 = vpop.xlane.xlu1 %26 }
 0x137   :  { %v40_v19 = vpop.xlane.xlu1 %39 }
 0x13a   :  { %v88_v17 = vpop.eup %87 }
 0x13b   :  { %v24_v18 = vmul.f32 0.6931472, %v88_v17 }
 0x13d   :  { %v28_v20 = vmul.f32 10.0, %v24_v18  ;;  %v41_v21 = vsub.f32 %v40_v19, %v24_v18 }
 0x13f   :  { %v29_v22 = vsub.f32 %v27_v16, %v28_v20  ;;  %v43_v24 = vmul.f32 0.8888889, %v41_v21 }
 0x141   :  { %v42_v23 = vmul.f32 0.011111111, %v29_v22 }
 0x143   :  { %v44_v25 = vadd.f32 %v43_v24, %v42_v23 }
 0x145   :  { %v45_v26 = vsub.f32 0.0, %v44_v25 }
 0x147   :  { %v54_v27 = vsel %vm53_vm2, %v45_v26, 0.0 }
 0x148   :  { %55 = vadd.xlane.f32.xlu1 %v54_v27 }
 0x1d5   :  { %v56_v28 = vpop.xlane.xlu1 %55 }
 0x1d6   :  { %v57_v29 = vrot.slane %v56_v28, 4 }
 0x1d8   :  { %v58_v30 = vadd.f32 %v57_v29, %v56_v28 }
 0x1da   :  { %v59_v31 = vrot.slane %v58_v30, 2 }
 0x1dc   :  { %v60_v32 = vadd.f32 %v59_v31, %v58_v30 }
 0x1de   :  { %v61_v33 = vrot.slane %v60_v32, 1 }
 0x1e0   :  { %v62_v34 = vadd.f32 %v61_v33, %v60_v32 }
 0x1e2   :  { %80 = vpush %v62_v34 }
 0x213   :  { %s81_s13 = spop %80 }
 0x214   :  { %v64_v35 = vstv %s81_s13 }
 0x215   :  { %65 = vst [vmem:[#allocation2] sm:$0xff] %v64_v35 }
 0x216   :  { %100 = shalt.err (!%p97_p4)
}
 0x217   :  { %s101_s17 = scalar_lea.hbm %s154_s2, 128 }
 0x218   :  { %p102_p5 = scmp.ne.s32.totalorder %s154_s2, %s101_s17  ;;  %p105_p6 = scmp.lt.u32.totalorder %s101_s17, %s154_s2 }
 0x21a   :  { %p107_p7 = pnand %p105_p6, %p102_p5 }
 0x21c   :  { %110 = shalt.err (!%p107_p7)
}
 0x21d   :  { %75 = dma.vmem_to_hbm [thread:$0]  %s73_s1, 128, %s154_s2, [#allocation3]  }
 0x21e   :  { %111 = dma.done.wait [#allocation3], 128  }
 0x21f   :  { %112 = vsyncadd [#allocation3], 4294967168 }
 0x220   :  { %79 = vsyncpa [#allocation3], 1 }

</bundles_post_ra>
